<compile_context>
chip_gen: v7x
topology: tpu7x:2x2x1
jax: 0.10.0
libtpu: 0.0.40
codegen_flags: <defaults>
</compile_context>

<pallas_src>
import jax
import jax.numpy as jnp
from jax.experimental import pallas as pl
from jax.experimental.pallas import tpu as pltpu


def del_ref_pool_kernel(node_ref, dist_ref, seg_ref,
                        wn1_ref, bn1_ref, wn2_ref, bn2_ref,
                        wd_ref, bd_ref, out_ref):
    """Per-node MLP + dist gate + segment-sum pooling, accumulated into out_ref."""
    i = pl.program_id(1)

    @pl.when(i == 0)
    def _init():
        out_ref[...] = jnp.zeros_like(out_ref)

    # ---- n_dec(node_vec): Linear -> ReLU -> Linear -> ReLU -----------------------
    x = node_ref[...]                                                    # (tile_n, n_in)
    h = jnp.dot(x, wn1_ref[...], preferred_element_type=jnp.float32) + bn1_ref[...]
    h = jnp.maximum(h, 0.0)                                              # f32 elementwise
    h = h.astype(wn2_ref.dtype)                                          # feed MXU in compute dtype
    h = jnp.dot(h, wn2_ref[...], preferred_element_type=jnp.float32) + bn2_ref[...]
    h = jnp.maximum(h, 0.0)                                              # (tile_n, n_h) f32

    # ---- dfl(dist): Linear(1, n_h) + Sigmoid gate ---------------------------------
    d = dist_ref[...]                                                    # (tile_n, 1) f32
    gate = jax.nn.sigmoid(d * wd_ref[...] + bd_ref[...])                 # (tile_n, n_h)
    score = h * gate                                                     # (tile_n, n_h) f32

    # ---- segment (graph) pooling via lane-dense one-hot matmul --------------------
    seg = seg_ref[...]                                                   # (1, tile_n) int32
    num_graphs = out_ref.shape[0]
    gid = jax.lax.broadcasted_iota(jnp.int32, (num_graphs, seg.shape[1]), 0)
    onehot = (seg == gid).astype(jnp.float32)                            # (B, tile_n); pad rows (-1) -> 0
    out_ref[...] += jnp.dot(onehot, score, preferred_element_type=jnp.float32)


def del_ref_decoder_forward(node_vec, dist_vec, seg_ids, fp_vec,
                            wn1, bn1, wn2, bn2, wd, bd, ws, bs,
                            wf1, bf1, wf2, bf2, *, num_graphs,
                            tile_n=2048, num_cores=2,
                            compute_dtype=jnp.float32):
    """node_vec: (N, n_in), dist_vec: (N,), seg_ids: (N,) int, fp_vec: (B, K, fp_in).
    Weights stored as (in, out); biases 1-D.

    tile_n: node rows per grid step.  Size it for DMA efficiency / per-step overhead
    (1024-4096 recommended for large N; must be a multiple of 128), not the MXU width.
    num_cores: leading parallel grid axis; 2 lets v7x shard the node loop across both
    TensorCores (harmless on single-core v5e/v6e).
    compute_dtype: jnp.bfloat16 casts node_vec / wn1 / wn2 for the MXU (f32 accumulation,
    f32 elementwise); recommended for production on v6e/v7x.
    Returns (B, n_o)."""
    n_nodes, n_in = node_vec.shape
    n_h = wn2.shape[1]
    b = fp_vec.shape[0]
    assert b == num_graphs
    assert tile_n % 128 == 0, "tile_n must be a multiple of 128"
    assert num_cores >= 1

    # Pad node rows so the grid is (num_cores, steps_per_core); padded rows get seg -1.
    steps_per_core = max(1, pl.cdiv(n_nodes, tile_n * num_cores))
    n_pad = steps_per_core * num_cores * tile_n
    pad = n_pad - n_nodes

    node_p = jnp.pad(node_vec, ((0, pad), (0, 0))).astype(compute_dtype)
    dist_p = jnp.pad(dist_vec.reshape(-1, 1).astype(jnp.float32), ((0, pad), (0, 0)))
    seg_p = jnp.pad(seg_ids.astype(jnp.int32), ((0, pad),),
                    constant_values=-1).reshape(1, -1)                   # lane-dense (1, N)

    wn1_c = wn1.astype(compute_dtype)
    wn2_c = wn2.astype(compute_dtype)
    bn1_r = bn1.reshape(1, -1).astype(jnp.float32)
    bn2_r = bn2.reshape(1, -1).astype(jnp.float32)
    wd_r = wd.reshape(1, -1).astype(jnp.float32)
    bd_r = bd.reshape(1, -1).astype(jnp.float32)

    node_idx = lambda c, i: (c * steps_per_core + i, 0)
    const2 = lambda c, i: (0, 0)

    # Per-core partial pooled sums (num_cores, B, n_h); summed + finished in JAX below.
    partials = pl.pallas_call(
        del_ref_pool_kernel,
        out_shape=jax.ShapeDtypeStruct((num_cores, num_graphs, n_h), jnp.float32),
        grid=(num_cores, steps_per_core),
        in_specs=[
            # streamed per-node tiles (DMA/compute pipelined by BlockSpec)
            pl.BlockSpec((tile_n, n_in), node_idx),
            pl.BlockSpec((tile_n, 1), node_idx),
            pl.BlockSpec((1, tile_n), lambda c, i: (0, c * steps_per_core + i)),
            # weights/biases: constant block index -> VMEM-resident, one DMA total
            pl.BlockSpec((n_in, n_h), const2),
            pl.BlockSpec((1, n_h), const2),
            pl.BlockSpec((n_h, n_h), const2),
            pl.BlockSpec((1, n_h), const2),
            pl.BlockSpec((1, n_h), const2),
            pl.BlockSpec((1, n_h), const2),
        ],
        out_specs=pl.BlockSpec((None, num_graphs, n_h), lambda c, i: (c, 0, 0)),
        compiler_params=pltpu.CompilerParams(
            # inner axis carries the resident pooled accumulator -> arbitrary;
            # leading axis is independent per core -> parallel (v7x megacore).
            dimension_semantics=("parallel", "arbitrary")),
    )(node_p, dist_p, seg_p, wn1_c, bn1_r, wn2_c, bn2_r, wd_r, bd_r)

    # ---- tiny graph-level epilogue (B rows) in plain JAX ---------------------------
    pooled_sum = partials.sum(axis=0)                                    # (B, n_h)
    counts = jnp.zeros((num_graphs,), jnp.float32).at[seg_ids].add(1.0)  # per-graph node counts
    # gap == global_mean_pool (see TODO at top); empty graphs -> pooled = 0.
    pooled = pooled_sum / jnp.maximum(counts, 1.0)[:, None]
    s = pooled @ ws.astype(jnp.float32) + bs.astype(jnp.float32)         # score_head, identity act
    fpm = fp_vec.astype(jnp.float32).mean(axis=1)                        # (B, fp_in)
    f = jnp.maximum(fpm @ wf1.astype(jnp.float32) + bf1.astype(jnp.float32), 0.0)
    f = jax.nn.sigmoid(f @ wf2.astype(jnp.float32) + bf2.astype(jnp.float32))
    return (s * f).astype(node_vec.dtype)


if __name__ == "__main__":
    # Module config (small): node_input_size=32, node_emb_size=64,
    # fp_input_size=64, fp_emb_size=32, output_size=16.
    node_input_size, node_emb_size = 32, 64
    fp_input_size, fp_emb_size = 64, 32
    output_size = 16
    num_graphs, fp_seq = 4, 8
    nodes_per_graph = (80, 70, 90, 60)
    n_nodes = sum(nodes_per_graph)

    key = jax.random.PRNGKey(0)
    keys = jax.random.split(key, 15)

    node_vec = jax.random.normal(keys[0], (n_nodes, node_input_size), jnp.float32)
    dist_vec = jax.random.uniform(keys[1], (n_nodes,), jnp.float32)
    fp_vec = jax.random.normal(keys[2], (num_graphs, fp_seq, fp_input_size), jnp.float32)
    seg_ids = jnp.concatenate(
        [jnp.full((c,), g, jnp.int32) for g, c in enumerate(nodes_per_graph)])

    def linear_init(kw, kb, fan_in, fan_out):
        lim = 1.0 / jnp.sqrt(fan_in)
        w = jax.random.uniform(kw, (fan_in, fan_out), jnp.float32, -lim, lim)
        b = jax.random.uniform(kb, (fan_out,), jnp.float32, -lim, lim)
        return w, b

    wn1, bn1 = linear_init(keys[3], keys[4], node_input_size, node_emb_size)
    wn2, bn2 = linear_init(keys[5], keys[6], node_emb_size, node_emb_size)
    wd, bd = linear_init(keys[7], keys[8], 1, node_emb_size)
    ws, bs = linear_init(keys[9], keys[10], node_emb_size, output_size)
    wf1, bf1 = linear_init(keys[11], keys[12], fp_input_size, fp_emb_size)
    wf2, bf2 = linear_init(keys[13], keys[14], fp_emb_size, output_size)

    # Pure-JAX reference (same semantics as the PyTorch forward, gap = mean pool).
    h = jnp.maximum(node_vec @ wn1 + bn1, 0.0)
    h = jnp.maximum(h @ wn2 + bn2, 0.0)
    gate = jax.nn.sigmoid(dist_vec[:, None] * wd + bd)
    score = h * gate
    onehot = (seg_ids[:, None] == jnp.arange(num_graphs)[None, :]).astype(jnp.float32)
    pooled = (onehot.T @ score) / onehot.sum(0)[:, None]
    ref = pooled @ ws + bs
    fpm = fp_vec.mean(axis=1)
    ref = ref * jax.nn.sigmoid(jnp.maximum(fpm @ wf1 + bf1, 0.0) @ wf2 + bf2)

    # Small tiles here only so the tiny test exercises multi-step accumulation and both
    # core slabs; production should use the default tile_n (1024-4096).
    out_f32 = del_ref_decoder_forward(
        node_vec, dist_vec, seg_ids, fp_vec,
        wn1, bn1, wn2, bn2, wd, bd, ws, bs, wf1, bf1, wf2, bf2,
        num_graphs=num_graphs, tile_n=128, num_cores=2,
        compute_dtype=jnp.float32)
    out_f32 = jax.block_until_ready(out_f32)
    assert out_f32.shape == (num_graphs, output_size)
    assert jnp.allclose(out_f32, ref, atol=1e-4, rtol=1e-4), \
        float(jnp.max(jnp.abs(out_f32 - ref)))

    # bf16 streamed-operand path (recommended on v6e/v7x): looser tolerance.
    out_bf16 = del_ref_decoder_forward(
        node_vec, dist_vec, seg_ids, fp_vec,
        wn1, bn1, wn2, bn2, wd, bd, ws, bs, wf1, bf1, wf2, bf2,
        num_graphs=num_graphs, tile_n=256, num_cores=2,
        compute_dtype=jnp.bfloat16)
    out_bf16 = jax.block_until_ready(out_bf16)
    assert out_bf16.shape == (num_graphs, output_size)
    assert jnp.allclose(out_bf16, ref, atol=2e-2, rtol=2e-2), \
        float(jnp.max(jnp.abs(out_bf16 - ref)))

    print("KERNEL_OK")
</pallas_src>

<mosaic_0001>
module attributes {stable_mosaic.version = 11 : i64} {
  func.func @del_ref_pool_kernel(%arg0: i32, %arg1: i32, %arg2: memref<128x32xf32, #tpu.memory_space<vmem>>, %arg3: memref<128x1xf32, #tpu.memory_space<vmem>>, %arg4: memref<1x128xi32, #tpu.memory_space<vmem>>, %arg5: memref<32x64xf32, #tpu.memory_space<vmem>>, %arg6: memref<1x64xf32, #tpu.memory_space<vmem>>, %arg7: memref<64x64xf32, #tpu.memory_space<vmem>>, %arg8: memref<1x64xf32, #tpu.memory_space<vmem>>, %arg9: memref<1x64xf32, #tpu.memory_space<vmem>>, %arg10: memref<1x64xf32, #tpu.memory_space<vmem>>, %arg11: memref<1x4x64xf32, #tpu.memory_space<vmem>>) attributes {dimension_semantics = [#tpu.dimension_semantics<parallel>, #tpu.dimension_semantics<arbitrary>], iteration_bounds = array<i64: 2, 2>, scalar_prefetch = 0 : i64, scratch_operands = 0 : i64, tpu.core_type = #tpu.core_type<tc>, window_params = [{transform_indices = @transform_0, window_bounds = array<i64: 128, 32>}, {transform_indices = @transform_1, window_bounds = array<i64: 128, 1>}, {transform_indices = @transform_2, window_bounds = array<i64: 1, 128>}, {pipeline_mode = #tpu.pipeline_mode<synchronous>, transform_indices = @transform_3, window_bounds = array<i64: 32, 64>}, {pipeline_mode = #tpu.pipeline_mode<synchronous>, transform_indices = @transform_4, window_bounds = array<i64: 1, 64>}, {pipeline_mode = #tpu.pipeline_mode<synchronous>, transform_indices = @transform_5, window_bounds = array<i64: 64, 64>}, {pipeline_mode = #tpu.pipeline_mode<synchronous>, transform_indices = @transform_6, window_bounds = array<i64: 1, 64>}, {pipeline_mode = #tpu.pipeline_mode<synchronous>, transform_indices = @transform_7, window_bounds = array<i64: 1, 64>}, {pipeline_mode = #tpu.pipeline_mode<synchronous>, transform_indices = @transform_8, window_bounds = array<i64: 1, 64>}, {transform_indices = @transform_9, window_bounds = array<i64: 1, 4, 64>}]} {
    %c0_i32 = arith.constant 0 : i32
    %0 = arith.cmpi eq, %arg1, %c0_i32 : i32
    %1 = arith.extui %0 : i1 to i32
    %c0_i32_0 = arith.constant 0 : i32
    %2 = arith.cmpi ne, %1, %c0_i32_0 : i32
    scf.if %2 {
      %cst_29 = arith.constant 0.000000e+00 : f32
      %45 = vector.broadcast %cst_29 : f32 to vector<4x64xf32>
      %c0_30 = arith.constant 0 : index
      %c0_31 = arith.constant 0 : index
      %c0_32 = arith.constant 0 : index
      %46 = vector.load %arg11[%c0_30, %c0_31, %c0_32] : memref<1x4x64xf32, #tpu.memory_space<vmem>>, vector<1x4x64xf32>
      %47 = vector.shape_cast %46 : vector<1x4x64xf32> to vector<4x64xf32>
      %48 = vector.shape_cast %45 : vector<4x64xf32> to vector<1x4x64xf32>
      tpu.vector_store %arg11[%c0_30, %c0_31, %c0_32], %48 {strides = array<i32>} : memref<1x4x64xf32, #tpu.memory_space<vmem>>, vector<1x4x64xf32>,
    } else {
    }
    %c0 = arith.constant 0 : index
    %c0_1 = arith.constant 0 : index
    %3 = vector.load %arg2[%c0, %c0_1] : memref<128x32xf32, #tpu.memory_space<vmem>>, vector<128x32xf32>
    %c0_2 = arith.constant 0 : index
    %c0_3 = arith.constant 0 : index
    %4 = vector.load %arg5[%c0_2, %c0_3] : memref<32x64xf32, #tpu.memory_space<vmem>>, vector<32x64xf32>
    %cst = arith.constant dense<0.000000e+00> : vector<128x64xf32>
    %5 = tpu.matmul %3, %4, %cst {dimension_numbers = #tpu.dot_dimension_numbers<[1], [0], [0], [1], [0, 0, 1, 1], [], []>} : vector<128x32xf32>, vector<32x64xf32>, vector<128x64xf32> -> vector<128x64xf32>
    %c0_4 = arith.constant 0 : index
    %c0_5 = arith.constant 0 : index
    %6 = vector.load %arg6[%c0_4, %c0_5] : memref<1x64xf32, #tpu.memory_space<vmem>>, vector<1x64xf32>
    %7 = vector.broadcast %6 : vector<1x64xf32> to vector<128x64xf32>
    %8 = arith.addf %5, %7 : vector<128x64xf32>
    %cst_6 = arith.constant 0.000000e+00 : f32
    %9 = vector.broadcast %cst_6 : f32 to vector<128x64xf32>
    %10 = arith.maximumf %8, %9 : vector<128x64xf32>
    %c0_7 = arith.constant 0 : index
    %c0_8 = arith.constant 0 : index
    %11 = vector.load %arg7[%c0_7, %c0_8] : memref<64x64xf32, #tpu.memory_space<vmem>>, vector<64x64xf32>
    %cst_9 = arith.constant dense<0.000000e+00> : vector<128x64xf32>
    %12 = tpu.matmul %10, %11, %cst_9 {dimension_numbers = #tpu.dot_dimension_numbers<[1], [0], [0], [1], [0, 0, 1, 1], [], []>} : vector<128x64xf32>, vector<64x64xf32>, vector<128x64xf32> -> vector<128x64xf32>
    %c0_10 = arith.constant 0 : index
    %c0_11 = arith.constant 0 : index
    %13 = vector.load %arg8[%c0_10, %c0_11] : memref<1x64xf32, #tpu.memory_space<vmem>>, vector<1x64xf32>
    %14 = vector.broadcast %13 : vector<1x64xf32> to vector<128x64xf32>
    %15 = arith.addf %12, %14 : vector<128x64xf32>
    %cst_12 = arith.constant 0.000000e+00 : f32
    %16 = vector.broadcast %cst_12 : f32 to vector<128x64xf32>
    %17 = arith.maximumf %15, %16 : vector<128x64xf32>
    %c0_13 = arith.constant 0 : index
    %c0_14 = arith.constant 0 : index
    %18 = vector.load %arg3[%c0_13, %c0_14] : memref<128x1xf32, #tpu.memory_space<vmem>>, vector<128x1xf32>
    %c0_15 = arith.constant 0 : index
    %c0_16 = arith.constant 0 : index
    %19 = vector.load %arg9[%c0_15, %c0_16] : memref<1x64xf32, #tpu.memory_space<vmem>>, vector<1x64xf32>
    %20 = vector.broadcast %18 : vector<128x1xf32> to vector<128x64xf32>
    %21 = vector.broadcast %19 : vector<1x64xf32> to vector<128x64xf32>
    %22 = arith.mulf %20, %21 : vector<128x64xf32>
    %c0_17 = arith.constant 0 : index
    %c0_18 = arith.constant 0 : index
    %23 = vector.load %arg10[%c0_17, %c0_18] : memref<1x64xf32, #tpu.memory_space<vmem>>, vector<1x64xf32>
    %24 = vector.broadcast %23 : vector<1x64xf32> to vector<128x64xf32>
    %25 = arith.addf %22, %24 : vector<128x64xf32>
    %26 = arith.negf %25 : vector<128x64xf32>
    %27 = math.exp %26 : vector<128x64xf32>
    %cst_19 = arith.constant 1.000000e+00 : f32
    %28 = vector.broadcast %cst_19 : f32 to vector<128x64xf32>
    %29 = arith.addf %28, %27 : vector<128x64xf32>
    %30 = arith.divf %28, %29 : vector<128x64xf32>
    %31 = arith.mulf %17, %30 : vector<128x64xf32>
    %c0_20 = arith.constant 0 : index
    %c0_21 = arith.constant 0 : index
    %32 = vector.load %arg4[%c0_20, %c0_21] : memref<1x128xi32, #tpu.memory_space<vmem>>, vector<1x128xi32>
    %33 = tpu.iota {dimensions = array<i32: 0>} : vector<4x128xi32>
    %34 = vector.broadcast %32 : vector<1x128xi32> to vector<4x128xi32>
    %35 = arith.cmpi eq, %34, %33 : vector<4x128xi32>
    %36 = arith.extui %35 : vector<4x128xi1> to vector<4x128xi32>
    %37 = arith.sitofp %36 : vector<4x128xi32> to vector<4x128xf32>
    %c0_22 = arith.constant 0 : index
    %c0_23 = arith.constant 0 : index
    %c0_24 = arith.constant 0 : index
    %38 = vector.load %arg11[%c0_22, %c0_23, %c0_24] : memref<1x4x64xf32, #tpu.memory_space<vmem>>, vector<1x4x64xf32>
    %39 = vector.shape_cast %38 : vector<1x4x64xf32> to vector<4x64xf32>
    %cst_25 = arith.constant dense<0.000000e+00> : vector<4x64xf32>
    %40 = tpu.matmul %37, %31, %cst_25 {dimension_numbers = #tpu.dot_dimension_numbers<[1], [0], [0], [1], [0, 0, 1, 1], [], []>} : vector<4x128xf32>, vector<128x64xf32>, vector<4x64xf32> -> vector<4x64xf32>
    %41 = arith.addf %39, %40 : vector<4x64xf32>
    %c0_26 = arith.constant 0 : index
    %c0_27 = arith.constant 0 : index
    %c0_28 = arith.constant 0 : index
    %42 = vector.load %arg11[%c0_26, %c0_27, %c0_28] : memref<1x4x64xf32, #tpu.memory_space<vmem>>, vector<1x4x64xf32>
    %43 = vector.shape_cast %42 : vector<1x4x64xf32> to vector<4x64xf32>
    %44 = vector.shape_cast %41 : vector<4x64xf32> to vector<1x4x64xf32>
    tpu.vector_store %arg11[%c0_26, %c0_27, %c0_28], %44 {strides = array<i32>} : memref<1x4x64xf32, #tpu.memory_space<vmem>>, vector<1x4x64xf32>,
    return
  }
  func.func @transform_0(%arg0: i32, %arg1: i32) -> (i32, i32) {
    %c2_i32 = arith.constant 2 : i32
    %0 = arith.muli %arg0, %c2_i32 : i32
    %1 = arith.addi %0, %arg1 : i32
    %c0_i32 = arith.constant 0 : i32
    %c0_i32_0 = arith.constant 0 : i32
    return %1, %c0_i32 : i32, i32
  }
  func.func @transform_1(%arg0: i32, %arg1: i32) -> (i32, i32) {
    %c2_i32 = arith.constant 2 : i32
    %0 = arith.muli %arg0, %c2_i32 : i32
    %1 = arith.addi %0, %arg1 : i32
    %c0_i32 = arith.constant 0 : i32
    %c0_i32_0 = arith.constant 0 : i32
    return %1, %c0_i32 : i32, i32
  }
  func.func @transform_2(%arg0: i32, %arg1: i32) -> (i32, i32) {
    %c2_i32 = arith.constant 2 : i32
    %0 = arith.muli %arg0, %c2_i32 : i32
    %1 = arith.addi %0, %arg1 : i32
    %c0_i32 = arith.constant 0 : i32
    %c0_i32_0 = arith.constant 0 : i32
    return %c0_i32, %1 : i32, i32
  }
  func.func @transform_3(%arg0: i32, %arg1: i32) -> (i32, i32) {
    %c0_i32 = arith.constant 0 : i32
    %c0_i32_0 = arith.constant 0 : i32
    %c0_i32_1 = arith.constant 0 : i32
    return %c0_i32, %c0_i32_0 : i32, i32
  }
  func.func @transform_4(%arg0: i32, %arg1: i32) -> (i32, i32) {
    %c0_i32 = arith.constant 0 : i32
    %c0_i32_0 = arith.constant 0 : i32
    %c0_i32_1 = arith.constant 0 : i32
    return %c0_i32, %c0_i32_0 : i32, i32
  }
  func.func @transform_5(%arg0: i32, %arg1: i32) -> (i32, i32) {
    %c0_i32 = arith.constant 0 : i32
    %c0_i32_0 = arith.constant 0 : i32
    %c0_i32_1 = arith.constant 0 : i32
    return %c0_i32, %c0_i32_0 : i32, i32
  }
  func.func @transform_6(%arg0: i32, %arg1: i32) -> (i32, i32) {
    %c0_i32 = arith.constant 0 : i32
    %c0_i32_0 = arith.constant 0 : i32
    %c0_i32_1 = arith.constant 0 : i32
    return %c0_i32, %c0_i32_0 : i32, i32
  }
  func.func @transform_7(%arg0: i32, %arg1: i32) -> (i32, i32) {
    %c0_i32 = arith.constant 0 : i32
    %c0_i32_0 = arith.constant 0 : i32
    %c0_i32_1 = arith.constant 0 : i32
    return %c0_i32, %c0_i32_0 : i32, i32
  }
  func.func @transform_8(%arg0: i32, %arg1: i32) -> (i32, i32) {
    %c0_i32 = arith.constant 0 : i32
    %c0_i32_0 = arith.constant 0 : i32
    %c0_i32_1 = arith.constant 0 : i32
    return %c0_i32, %c0_i32_0 : i32, i32
  }
  func.func @transform_9(%arg0: i32, %arg1: i32) -> (i32, i32, i32) {
    %c0_i32 = arith.constant 0 : i32
    %c0_i32_0 = arith.constant 0 : i32
    %c0_i32_1 = arith.constant 0 : i32
    return %arg0, %c0_i32, %c0_i32_0 : i32, i32, i32
  }
}

</mosaic_0001>

<bundles_post_ra>
// kernel: tpu_custom_call.1
= control target key start
LH: loop header
LB: loop body
LE: loop exit
PB: predicated region body
PF: predicated region fallthrough
CT: control target
= control target key end

     0   :  { %14 = vsyncpa [#allocation3], 0  ;;  %s2260_s0 = inlined_call_operand.vmem [shape: f32[512,32], index: 0, kind: input, shape index: {}]   ;;  %s2261_s1 = inlined_call_operand.vmem [shape: f32[512,1], index: 1, kind: input, shape index: {}]   ;;  %s2262_s2 = inlined_call_operand.vmem [shape: s32[1,512], index: 2, kind: input, shape index: {}]   ;;  %s2263_s3 = inlined_call_operand.vmem [shape: f32[32,64], index: 3, kind: input, shape index: {}]   ;;  %s2264_s4 = inlined_call_operand.vmem [shape: f32[1,64], index: 4, kind: input, shape index: {}]   ;;  %s2265_s5 = inlined_call_operand.vmem [shape: f32[64,64], index: 5, kind: input, shape index: {}]   ;;  %s2266_s6 = inlined_call_operand.vmem [shape: f32[1,64], index: 6, kind: input, shape index: {}]   ;;  %s2267_s7 = inlined_call_operand.vmem [shape: f32[1,64], index: 7, kind: input, shape index: {}]   ;;  %s2268_s8 = inlined_call_operand.vmem [shape: f32[1,64], index: 8, kind: input, shape index: {}]   ;;  %s2269_s9 = inlined_call_operand.hbm [shape: f32[2,4,64], index: 9, kind: output, shape index: {}]  }
   0x1   :  { %16 = vsyncpa [#allocation3 + $0x1], 0  ;;  %s1925_s30 = smov 0   ;;  %s1927_s10 = smov 0  }
   0x2   :  { %s1929_s11 = smov 0   ;;  %s1931_s12 = smov 0  }
   0x3   :  { %s1933_s13 = smov 0   ;;  %s1935_s14 = smov 0  }
   0x4   :  { %s1937_s15 = smov 0   ;;  %s1939_s16 = smov 0  }
   0x5 LB: > { %2275 = sst [smem:[#allocation5_spill]] %s1846_s11  ;;  %s1334_s17 = sadd.s32 4294967295, %s1866_s16   ;;  %s1866_s16 = sphi %s1939_s16, %s22_s16   ;;  %s1862_s15 = sphi %s1937_s15, %s2289_s15   ;;  %s1858_s14 = sphi %s1935_s14, %s2288_s14   ;;  %s1854_s13 = sphi %s1933_s13, %s2287_s13   ;;  %s1850_s12 = sphi %s1931_s12, %s2286_s12   ;;  %s1846_s11 = sphi %s1929_s11, %s2285_s11   ;;  %s1842_s10 = sphi %s1927_s10, %s2291_s10   ;;  %s1838_s30 = sphi %s1925_s30, %s2290_s30  }
   0x6   : > { %2276 = sst [smem:[#allocation6_spill]] %s1858_s14  ;;  %s1335_s18 = sadd.s32 4294967294, %s1866_s16  }
   0x7   : > { %2277 = sst [smem:[#allocation7_spill]] %s1862_s15  ;;  %s31_s19 = sadd.s32 1, %s1858_s14 }
   0x8   : > { %p32_p0 = scmp.ge.s32.totalorder %s31_s19, 2  ;;  %s34_s20 = sadd.s32 1, %s1862_s15 }
   0x9   : > { %p267_p1 = scmp.ne.s32.totalorder %s1846_s11, %s1842_s10  ;;  %p268_p2 = scmp.eq.s32.totalorder %s1334_s17, 3 }
   0xa   : > { %s2293_s19 = smov (%p32_p0, %s31_s19), 0  ;;  %s2295_s20 = smov (!%p32_p0, %s34_s20), %s1862_s15 }
   0xb   : > { %2278 = sst [smem:[#allocation8_spill]] %s2293_s19  ;;  %p1974_p3 = por %p268_p2, %p267_p1 }
   0xc   : > { %p273_p4 = scmp.ne.s32.totalorder %s1842_s10, %s1838_s30  ;;  %p36_p5 = scmp.ge.s32.totalorder %s2295_s20, 2 }
   0xd   : > { %p274_p6 = scmp.eq.s32.totalorder %s1335_s18, 3  ;;  %p1344_p7 = scmp.ge.s32.totalorder %s1866_s16, 1 }
   0xe   : > { %p346_p8 = scmp.lt.s32.totalorder %s1866_s16, 5  ;;  %s2297_s20 = smov (%p36_p5, %s2295_s20), 0 }
   0xf   : > { %2280 = sst [smem:[#allocation9_spill]] %s2297_s20  ;;  %p1984_p9 = por %p274_p6, %p273_p4 }
  0x10   : > { %p347_p10 = pnand %p1344_p7, %p346_p8  ;;  %s254_s23 = ssub.s32 %s1862_s15, %s2297_s20 }
  0x11   : > { %s257_s24 = sadd.s32 1, %s1846_s11  ;;  %p255_p11 = scmp.eq.s32.totalorder %s254_s23, 0 }
  0x12   : > { %350 = sbr.rel (%p347_p10) target bundleno = 744 (0x2e8), region = 56  ;;  %s2273_s26 = sand.u32 (!%p347_p10), 1, %s1842_s10  }
  0x13   : > { %s1992_s25 = scalar_select %p255_p11, %s1846_s11, %s257_s24  }
  0x14   : > { %s1346_s27 = sshll.u32 (!%p347_p10), %s1854_s13, 1  ;;  %s1345_s28 = sshll.u32 (!%p347_p10), %s2273_s26, 2 }
  0x15   : > { %2282 = sst [smem:[#allocation10_spill]] %s1992_s25  ;;  %s397_s29 = sadd.s32 (!%p347_p10), %s1850_s12, %s1346_s27 }
  0x16   : > { %s1347_s17 = sshll.u32 (!%p347_p10), %s397_s29, 4  ;;  %p418_p13 = scmp.lt.s32.totalorder (!%p347_p10), %s397_s29, 3 }
  0x17   : > { %p399_p12 = scmp.lt.s32.totalorder (!%p347_p10), %s1347_s17, 63  ;;  %s2015_s11 = scalar_lea.vmem (!%p347_p10), [#allocation2], %s1345_s28 }
  0x18   : > { %p1353_p0 = scmp.ne.s32.totalorder (!%p347_p10), %s1850_s12, 0 }
  0x19   : > { %s2299_s17 = smov (!%p399_p12, %s1347_s17), 63  ;;  %s2301_s29 = smov (!%p418_p13, %s397_s29), 3 }
  0x1a   : > { %s1348_s18 = sshll.u32 %s2299_s17, 3  ;;  %s420_s25 = scalar_lea.vmem %s2262_s2, %s2301_s29  ;;  %vm427_vm0 = vcmask (!%p1353_p0), 519168   ;;  %v1868_v0 = vmov (!%p1353_p0), 0.0  }
  0x1b   : > { %s2004_s20 = scalar_lea.vmem %s2260_s0, %s1348_s18  ;;  %s2009_s14 = scalar_lea.vmem %s2261_s1, %s1348_s18  ;;  %428 = vst.msk [vmem:[%s2015_s11] sm:$0xf] (!%p1353_p0), %vm427_vm0, %v1868_v0 }
  0x1c   : > { %426 = sbr.rel (%p1353_p0) target bundleno = 35 (0x23), region = 60 }
  0x23 PF: > { %v445_v1 = vld [vmem:[%s2263_s3] sm:$0xff]  ;;  %v446_v2 = vld [vmem:[%s2263_s3 + $0x8] sm:$0xff]  ;;  %v447_v3 = vld [vmem:[%s2263_s3 + $0x10] sm:$0xff]  ;;  %vm456_vm1 = vcmask 261120   ;;  %v1869_v36 = vmov 0   ;;  %vm681_vm2 = vcmask 523264  }
  0x24   : > { %v1581_v4 = vpack.c.bf16 %v446_v2, %v445_v1  ;;  %v448_v5 = vld [vmem:[%s2263_s3 + $0x18] sm:$0xff]  ;;  %v429_v6 = vld [vmem:[%s2004_s20] sm:$0xff]  ;;  %v667_v9 = vld [vmem:[%s2265_s5 + $0x8] sm:$0xff]  ;;  %1706 = vset.pattern.permute.xlu0 %v1869_v36  ;;  %1707 = vset.pattern.permute.xlu1 %v1869_v36  ;;  %vm1871_vm3 = vmmov 0   ;;  %s1410_s15 = sshll.u32 %s1854_s13, 6  ;;  %s1243_s19 = sshll.u32 %s2015_s11, 4  ;;  %s2206_s19 = int_to_ptr.vmem [resolvable:$true] %s1243_s19 }
  0x25   : > { %v1585_v7 = vpack.c.bf16 %v448_v5, %v447_v3  ;;  %1482 = vmatprep.mubr.msk.f32.mxu0 %vm456_vm1, %v429_v6  ;;  %v666_v8 = vld [vmem:[%s2265_s5] sm:$0xff]  ;;  %v668_v10 = vld [vmem:[%s2265_s5 + $0x10] sm:$0xff]  ;;  %v669_v11 = vld [vmem:[%s2265_s5 + $0x18] sm:$0xff]  ;;  %vm1227_vm5 = vcmask 519168   ;;  %s2204_s29 = scalar_lea.hbm %s2269_s9, %s1410_s15  ;;  %s1772_s28 = scalar_lea.vmem %s2206_s19, 64 }
  0x26   : > { %1582 = vmatprep.subr.bf16.mxu0 %v1581_v4  ;;  %v430_v12 = vld [vmem:[%s2004_s20 + $0x8] sm:$0xff]  ;;  %v1589_v13 = vpack.c.bf16 %v667_v9, %v666_v8  ;;  %v1593_v14 = vpack.c.bf16 %v669_v11, %v668_v10  ;;  %v431_v15 = vld [vmem:[%s2004_s20 + $0x10] sm:$0xff]  ;;  %v670_v16 = vld [vmem:[%s2265_s5 + $0x20] sm:$0xff]  ;;  %p1773_p1 = scmp.ne.s32.totalorder %s2206_s19, %s1772_s28  ;;  %s1874_s13 = smov [#allocation2]  }
  0x27   : > { %1584 = vmatpush3.bf16.msra.mxu0 %v1581_v4  ;;  %v671_v17 = vld [vmem:[%s2265_s5 + $0x28] sm:$0xff]  ;;  %v432_v18 = vld [vmem:[%s2004_s20 + $0x18] sm:$0xff]  ;;  %v433_v20 = vld [vmem:[%s2004_s20 + $0x20] sm:$0xff]  ;;  %s1776_s12 = sshll.u32 %s1874_s13, 4  ;;  %s1777_s12 = int_to_ptr.vmem [resolvable:$false] %s1776_s12 }
  0x28   : > { %1586 = vmatprep.subr.bf16.mxu0 %v1585_v7  ;;  %1590 = vmatprep.subr.bf16.mxu1 %v1589_v13  ;;  %v1597_v19 = vpack.c.bf16 %v671_v17, %v670_v16  ;;  %v434_v21 = vld [vmem:[%s2004_s20 + $0x28] sm:$0xff]  ;;  %v435_v22 = vld [vmem:[%s2004_s20 + $0x30] sm:$0xff]  ;;  %v436_v23 = vld [vmem:[%s2004_s20 + $0x38] sm:$0xff]  ;;  %p1774_p2 = pnand %p1773_p1, %p1974_p3  ;;  %s1778_s18 = scalar_lea.vmem %s1777_s12, 128 }
  0x29   : > { %1592 = vmatpush3.bf16.msra.mxu1 %v1589_v13  ;;  %v437_v24 = vld [vmem:[%s2004_s20 + $0x40] sm:$0xff]  ;;  %v438_v25 = vld [vmem:[%s2004_s20 + $0x48] sm:$0xff]  ;;  %v439_v26 = vld [vmem:[%s2004_s20 + $0x50] sm:$0xff]  ;;  %p1779_p5 = scmp.lt.s32.totalorder %s2206_s19, %s1777_s12  ;;  %p1780_p6 = scmp.lt.s32.totalorder %s1778_s18, %s1772_s28 }
  0x2a   : > { %1594 = vmatprep.subr.bf16.mxu1 %v1593_v14  ;;  %v440_v27 = vld [vmem:[%s2004_s20 + $0x58] sm:$0xff]  ;;  %v441_v28 = vld [vmem:[%s2004_s20 + $0x60] sm:$0xff]  ;;  %v442_v29 = vld [vmem:[%s2004_s20 + $0x68] sm:$0xff]  ;;  %p1775_p4 = pneg %p1774_p2 }
  0x2b   : > { %1588 = vmatpush3.bf16.msra.mxu0 %v1585_v7  ;;  %v443_v30 = vld [vmem:[%s2004_s20 + $0x70] sm:$0xff]  ;;  %v444_v31 = vld [vmem:[%s2004_s20 + $0x78] sm:$0xff]  ;;  %v891_v35 = vld [vmem:[%s2009_s14] sm:$0xff]  ;;  %p1781_p7 = por %p1780_p6, %p1779_p5 }
  0x2c   : > { %v672_v32 = vld [vmem:[%s2265_s5 + $0x30] sm:$0xff]  ;;  %v673_v33 = vld [vmem:[%s2265_s5 + $0x38] sm:$0xff]  ;;  %910 = vperm.xlu0 %1706, %v891_v35   ;;  %v892_v38 = vld [vmem:[%s2009_s14 + $0x8] sm:$0xff] }
  0x2d   : > { %1596 = vmatpush3.bf16.msra.mxu1 %v1593_v14  ;;  %v1601_v34 = vpack.c.bf16 %v673_v33, %v672_v32  ;;  %v893_v37 = vld [vmem:[%s2009_s14 + $0x10] sm:$0xff]  ;;  %v894_v39 = vld [vmem:[%s2009_s14 + $0x18] sm:$0xff]  ;;  %v895_v40 = vld [vmem:[%s2009_s14 + $0x20] sm:$0xff]  ;;  %p1782_p8 = pnand %p1781_p7, %p1775_p4 }
  0x2e   : > { %1483 = vmatmul.mubr.msk.f32.vlgmr.msra.gmra.mrb[0].mxu0 %vm456_vm1, %v430_v12  ;;  %1598 = vmatprep.subr.bf16.mxu1 %v1597_v19  ;;  %v896_v41 = vld [vmem:[%s2009_s14 + $0x28] sm:$0xff]  ;;  %v897_v42 = vld [vmem:[%s2009_s14 + $0x30] sm:$0xff]  ;;  %v898_v43 = vld [vmem:[%s2009_s14 + $0x38] sm:$0xff] }
  0x2f   : > { %1485 = vmatprep.mubr.msk.f32.mxu0 %vm456_vm1, %v431_v15  ;;  %920 = vperm.xlu1 %1707, %v893_v37   ;;  %v899_v44 = vld [vmem:[%s2009_s14 + $0x40] sm:$0xff]  ;;  %v900_v45 = vld [vmem:[%s2009_s14 + $0x48] sm:$0xff]  ;;  %v901_v46 = vld [vmem:[%s2009_s14 + $0x50] sm:$0xff]  ;;  %v1870_v37 = vmov 0.0|0.0  }
  0x30   : > { %915 = vperm.xlu0 %1706, %v892_v38   ;;  %v902_v47 = vld [vmem:[%s2009_s14 + $0x58] sm:$0xff]  ;;  %v903_v48 = vld [vmem:[%s2009_s14 + $0x60] sm:$0xff]  ;;  %v904_v49 = vld [vmem:[%s2009_s14 + $0x68] sm:$0xff]  ;;  %1605 = vmatprep.subr.bf16.mxu0 %v1870_v37  ;;  %v1872_v38 = vmov 0.0  }
  0x31   : > { %1600 = vmatpush3.bf16.msra.mxu1 %v1597_v19  ;;  %v905_v50 = vld [vmem:[%s2009_s14 + $0x70] sm:$0xff]  ;;  %v906_v51 = vld [vmem:[%s2009_s14 + $0x78] sm:$0xff]  ;;  %v1354_v52 = vld [vmem:[%s2264_s4] ss:$0 sm:$0xff] }
  0x32   : > { %1486 = vmatmul.mubr.msk.f32.gmra.mrb[2].mxu0 %vm456_vm1, %v432_v18  ;;  %1602 = vmatprep.subr.bf16.mxu1 %v1601_v34 }
  0x33   : > { %1488 = vmatprep.mubr.msk.f32.mxu0 %vm456_vm1, %v433_v20  ;;  %925 = vperm.xlu1 %1707, %v894_v39  }
  0x34   : > { %930 = vperm.xlu0 %1706, %v895_v40  }
  0x35   : > { %1604 = vmatpush3.bf16.msra.mxu1 %v1601_v34 }
  0x36   : > { %1489 = vmatmul.mubr.msk.f32.gmra.mrb[4].mxu0 %vm456_vm1, %v434_v21 }
  0x37   : > { %1491 = vmatprep.mubr.msk.f32.mxu0 %vm456_vm1, %v435_v22  ;;  %935 = vperm.xlu1 %1707, %v896_v41  }
  0x38   : > { %940 = vperm.xlu0 %1706, %v897_v42  }
  0x3a   : > { %1492 = vmatmul.mubr.msk.f32.gmra.mrb[6].mxu0 %vm456_vm1, %v436_v23 }
  0x3b   : > { %1494 = vmatprep.mubr.msk.f32.mxu0 %vm456_vm1, %v437_v24  ;;  %945 = vperm.xlu1 %1707, %v898_v43  }
  0x3c   : > { %950 = vperm.xlu0 %1706, %v899_v44  }
  0x3e   : > { %1495 = vmatmul.mubr.msk.f32.gmra.mrb[8].mxu0 %vm456_vm1, %v438_v25 }
  0x3f   : > { %1497 = vmatprep.mubr.msk.f32.mxu0 %vm456_vm1, %v439_v26  ;;  %955 = vperm.xlu1 %1707, %v900_v45   ;;  %v2126_v45 = vld [vmem:[%s2267_s7] ss:$0 sm:$0xff] }
  0x40   : > { %960 = vperm.xlu0 %1706, %v901_v46  }
  0x42   : > { %1498 = vmatmul.mubr.msk.f32.gmra.mrb[10].mxu0 %vm456_vm1, %v440_v27 }
  0x43   : > { %1500 = vmatprep.mubr.msk.f32.mxu0 %vm456_vm1, %v441_v28  ;;  %965 = vperm.xlu1 %1707, %v902_v47   ;;  %v2132_v47 = vld [vmem:[%s2268_s8] ss:$0 sm:$0xff] }
  0x44   : > { %970 = vperm.xlu0 %1706, %v903_v48  }
  0x46   : > { %1501 = vmatmul.mubr.msk.f32.gmra.mrb[12].mxu0 %vm456_vm1, %v442_v29 }
  0x47   : > { %1503 = vmatprep.mubr.msk.f32.mxu0 %vm456_vm1, %v443_v30  ;;  %975 = vperm.xlu1 %1707, %v904_v49  }
  0x48   : > { %980 = vperm.xlu0 %1706, %v905_v50  }
  0x4a   : > { %1504 = vmatmul.mubr.msk.f32.gmra.mrb[14].mxu0 %vm456_vm1, %v444_v31 }
  0x4b   : > { %985 = vperm.xlu1 %1707, %v906_v51   ;;  %1578 = vmatprep.mubr.msk.f32.mxu0 %vm1871_vm3, %v1872_v38 }
  0xab   : > { %v911_v40 = vpop.permute.xlu0 %910 }
  0xac   : > { %v994_v48 = vmul.f32 %v2126_v45, %v911_v40 }
  0xae   : > { %v921_v39 = vpop.permute.xlu1 %920 }
  0xaf   : > { %v916_v42 = vpop.permute.xlu0 %915 }
  0xb0   : > { %v995_v46 = vmul.f32 %v2126_v45, %v916_v42 }
  0xb2   : > { %v926_v41 = vpop.permute.xlu1 %925 }
  0xb3   : > { %v931_v44 = vpop.permute.xlu0 %930  ;;  %v997_v50 = vmul.f32 %v2126_v45, %v926_v41 }
  0xb6   : > { %v936_v43 = vpop.permute.xlu1 %935 }
  0xb7   : > { %v941_v51 = vpop.permute.xlu0 %940 }
  0xba   : > { %v946_v49 = vpop.permute.xlu1 %945 }
 0x101   : > { %v1484_v53 = vpop.f32.mrb[0].mxu0 }
 0x102   : > { %v577_v54 = vadd.f32 %v1484_v53, %v1354_v52  ;;  %v571_v55 = vpop.f32.mrb[1].mxu0  ;;  %v1017_v53 = vadd.f32 %v2132_v47, %v994_v48 }
 0x103   : > { %v572_v56 = vadd.f32 %v1354_v52, %v571_v55  ;;  %v1020_v55 = vadd.f32 %v2132_v47, %v997_v50 }
 0x104   : > { %v651_v59 = vmax.f32 %v577_v54, 0.0  ;;  %v996_v54 = vmul.f32 %v2126_v45, %v921_v39 }
 0x105   : > { %v650_v57 = vmax.f32 %v572_v56, 0.0  ;;  %v1487_v58 = vpop.f32.mrb[2].mxu0  ;;  %v999_v56 = vmul.f32 %v2126_v45, %v936_v43 }
 0x106   : > { %v587_v60 = vadd.f32 %v1487_v58, %v1354_v52  ;;  %v581_v61 = vpop.f32.mrb[3].mxu0 }
 0x107   : > { %v582_v62 = vadd.f32 %v1354_v52, %v581_v61  ;;  %1522 = vmatprep.mubr.msk.f32.mxu1 %vm681_vm2, %v650_v57  ;;  %v956_v57 = vpop.permute.xlu1 %955  ;;  %v1019_v61 = vadd.f32 %v2132_v47, %v996_v54  ;;  %v2168_v54 = vld [vmem:[%s2266_s6] ss:$0 sm:$0xff] }
 0x108   : > { %1523 = vmatmul.mubr.msk.f32.vlgmr.msra.gmra.mrb[0].mxu1 %vm681_vm2, %v651_v59  ;;  %v653_v1 = vmax.f32 %v587_v60, 0.0  ;;  %v951_v59 = vpop.permute.xlu0 %950  ;;  %v1390_v60 = vmul.f32 -1.442695, %v1017_v53 }
 0x109   : > { %v652_v63 = vmax.f32 %v582_v62, 0.0  ;;  %v1490_v0 = vpop.f32.mrb[4].mxu0  ;;  %v998_v62 = vmul.f32 %v2126_v45, %v931_v44 }
 0x10a   : > { %v597_v2 = vadd.f32 %v1490_v0, %v1354_v52  ;;  %v591_v3 = vpop.f32.mrb[5].mxu0  ;;  %v1022_v0 = vadd.f32 %v2132_v47, %v999_v56 }
 0x10b   : > { %v592_v4 = vadd.f32 %v1354_v52, %v591_v3  ;;  %1525 = vmatprep.mubr.msk.f32.mxu1 %vm681_vm2, %v652_v63  ;;  %v1393_v63 = vmul.f32 -1.442695, %v1020_v55  ;;  %v1021_v3 = vadd.f32 %v2132_v47, %v998_v62 }
 0x10c   : > { %1526 = vmatmul.mubr.msk.f32.gmra.mrb[2].mxu1 %vm681_vm2, %v653_v1  ;;  %v655_v7 = vmax.f32 %v597_v2, 0.0  ;;  %v1001_v1 = vmul.f32 %v2126_v45, %v946_v49  ;;  %v1392_v2 = vmul.f32 -1.442695, %v1019_v61 }
 0x10d   : > { %v654_v5 = vmax.f32 %v592_v4, 0.0  ;;  %v1493_v6 = vpop.f32.mrb[6].mxu0  ;;  %v1000_v4 = vmul.f32 %v2126_v45, %v941_v51 }
 0x10e   : > { %v607_v8 = vadd.f32 %v1493_v6, %v1354_v52  ;;  %v601_v9 = vpop.f32.mrb[7].mxu0  ;;  %v1395_v6 = vmul.f32 -1.442695, %v1022_v0 }
 0x10f   : > { %v602_v10 = vadd.f32 %v1354_v52, %v601_v9  ;;  %1528 = vmatprep.mubr.msk.f32.mxu1 %vm681_vm2, %v654_v5  ;;  %v966_v5 = vpop.permute.xlu1 %965  ;;  %v1002_v9 = vmul.f32 %v2126_v45, %v951_v59 }
 0x110   : > { %1529 = vmatmul.mubr.msk.f32.gmra.mrb[4].mxu1 %vm681_vm2, %v655_v7  ;;  %v657_v13 = vmax.f32 %v607_v8, 0.0  ;;  %v1024_v7 = vadd.f32 %v2132_v47, %v1001_v1  ;;  %v961_v8 = vpop.permute.xlu0 %960 }
 0x111   : > { %v656_v11 = vmax.f32 %v602_v10, 0.0  ;;  %v1496_v12 = vpop.f32.mrb[8].mxu0  ;;  %v1003_v10 = vmul.f32 %v2126_v45, %v956_v57 }
 0x112   : > { %v617_v14 = vadd.f32 %v1496_v12, %v1354_v52  ;;  %v611_v15 = vpop.f32.mrb[9].mxu0  ;;  %v1023_v12 = vadd.f32 %v2132_v47, %v1000_v4 }
 0x113   : > { %v612_v16 = vadd.f32 %v1354_v52, %v611_v15  ;;  %1531 = vmatprep.mubr.msk.f32.mxu1 %vm681_vm2, %v656_v11  ;;  %v1394_v11 = vmul.f32 -1.442695, %v1021_v3  ;;  %v976_v15 = vpop.permute.xlu1 %975 }
 0x114   : > { %1532 = vmatmul.mubr.msk.f32.gmra.mrb[6].mxu1 %vm681_vm2, %v657_v13  ;;  %v659_v19 = vmax.f32 %v617_v14, 0.0  ;;  %v1397_v13 = vmul.f32 -1.442695, %v1024_v7  ;;  %v1025_v14 = vadd.f32 %v2132_v47, %v1002_v9 }
 0x115   : > { %v658_v17 = vmax.f32 %v612_v16, 0.0  ;;  %v1499_v18 = vpop.f32.mrb[10].mxu0  ;;  %v1026_v16 = vadd.f32 %v2132_v47, %v1003_v10 }
 0x116   : > { %v627_v20 = vadd.f32 %v1499_v18, %v1354_v52  ;;  %v621_v21 = vpop.f32.mrb[11].mxu0  ;;  %v971_v18 = vpop.permute.xlu0 %970 }
 0x117   : > { %v622_v22 = vadd.f32 %v1354_v52, %v621_v21  ;;  %1534 = vmatprep.mubr.msk.f32.mxu1 %vm681_vm2, %v658_v17  ;;  %v1005_v17 = vmul.f32 %v2126_v45, %v966_v5 }
 0x118   : > { %1535 = vmatmul.mubr.msk.f32.gmra.mrb[8].mxu1 %vm681_vm2, %v659_v19  ;;  %v661_v25 = vmax.f32 %v627_v20, 0.0  ;;  %v1396_v19 = vmul.f32 -1.442695, %v1023_v12  ;;  %v1004_v20 = vmul.f32 %v2126_v45, %v961_v8 }
 0x119   : > { %v660_v23 = vmax.f32 %v622_v22, 0.0  ;;  %v1502_v24 = vpop.f32.mrb[12].mxu0 }
 0x11a   : > { %v637_v26 = vadd.f32 %v1502_v24, %v1354_v52  ;;  %v631_v27 = vpop.f32.mrb[13].mxu0 }
 0x11b   : > { %v632_v28 = vadd.f32 %v1354_v52, %v631_v27  ;;  %1537 = vmatprep.mubr.msk.f32.mxu1 %vm681_vm2, %v660_v23  ;;  %v1398_v23 = vmul.f32 -1.442695, %v1025_v14  ;;  %v1007_v27 = vmul.f32 %v2126_v45, %v976_v15 }
 0x11c   : > { %1538 = vmatmul.mubr.msk.f32.gmra.mrb[10].mxu1 %vm681_vm2, %v661_v25  ;;  %v663_v31 = vmax.f32 %v637_v26, 0.0  ;;  %v1399_v25 = vmul.f32 -1.442695, %v1026_v16  ;;  %v1028_v26 = vadd.f32 %v2132_v47, %v1005_v17 }
 0x11d   : > { %v662_v29 = vmax.f32 %v632_v28, 0.0  ;;  %v1505_v30 = vpop.f32.mrb[14].mxu0  ;;  %v1030_v39 = vadd.f32 %v2132_v47, %v1007_v27 }
 0x11e   : > { %v647_v32 = vadd.f32 %v1505_v30, %v1354_v52  ;;  %v641_v33 = vpop.f32.mrb[15].mxu0  ;;  %v1006_v30 = vmul.f32 %v2126_v45, %v971_v18  ;;  %v1401_v38 = vmul.f32 -1.442695, %v1028_v26 }
 0x11f   : > { %v642_v34 = vadd.f32 %v1354_v52, %v641_v33  ;;  %1540 = vmatprep.mubr.msk.f32.mxu1 %vm681_vm2, %v662_v29  ;;  %v1018_v52 = vadd.f32 %v2132_v47, %v995_v46  ;;  %v1027_v29 = vadd.f32 %v2132_v47, %v1004_v20  ;;  %v981_v33 = vpop.permute.xlu0 %980  ;;  %v1403_v50 = vmul.f32 -1.442695, %v1030_v39 }
 0x120   : > { %1541 = vmatmul.mubr.msk.f32.gmra.mrb[12].mxu1 %vm681_vm2, %v663_v31  ;;  %v665_v36 = vmax.f32 %v647_v32, 0.0  ;;  %v986_v31 = vpop.permute.xlu1 %985  ;;  %v1029_v42 = vadd.f32 %v2132_v47, %v1006_v30  ;;  %v1008_v43 = vmul.f32 %v2126_v45, %v981_v33 }
 0x121   : > { %v664_v35 = vmax.f32 %v642_v34, 0.0  ;;  %v1391_v58 = vmul.f32 -1.442695, %v1018_v52  ;;  %v1009_v40 = vmul.f32 %v2126_v45, %v986_v31  ;;  %v1400_v41 = vmul.f32 -1.442695, %v1027_v29 }
 0x122   : > { %v1402_v52 = vmul.f32 -1.442695, %v1029_v42  ;;  %v1031_v53 = vadd.f32 %v2132_v47, %v1008_v43 }
 0x123   : > { %1543 = vmatprep.mubr.msk.f32.mxu1 %vm681_vm2, %v664_v35  ;;  %1708 = vpow2.f32 %v1391_v58  ;;  %v1032_v51 = vadd.f32 %v2132_v47, %v1009_v40 }
 0x124   : > { %1544 = vmatmul.mubr.msk.f32.gmra.mrb[14].mxu1 %vm681_vm2, %v665_v36  ;;  %1710 = vpow2.f32 %v1390_v60  ;;  %v1404_v62 = vmul.f32 -1.442695, %v1031_v53 }
 0x125   : > { %1712 = vpow2.f32 %v1393_v63  ;;  %v1405_v58 = vmul.f32 -1.442695, %v1032_v51 }
 0x126   : > { %1714 = vpow2.f32 %v1392_v2 }
 0x127   : > { %1716 = vpow2.f32 %v1395_v6 }
 0x128   : > { %1718 = vpow2.f32 %v1394_v11 }
 0x129   : > { %1720 = vpow2.f32 %v1397_v13 }
 0x12a   : > { %1722 = vpow2.f32 %v1396_v19 }
 0x12b   : > { %1724 = vpow2.f32 %v1398_v23 }
 0x12c   : > { %1726 = vpow2.f32 %v1399_v25 }
 0x12d   : > { %v1709_v21 = vpop.eup %1708 }
 0x12e   : > { %v1711_v22 = vpop.eup %1710  ;;  %v1082_v28 = vadd.f32 1.0, %v1709_v21 }
 0x12f   : > { %v1713_v24 = vpop.eup %1712  ;;  %v1081_v32 = vadd.f32 1.0, %v1711_v22 }
 0x130   : > { %v1715_v34 = vpop.eup %1714  ;;  %v1084_v35 = vadd.f32 1.0, %v1713_v24  ;;  %1728 = vrcp.f32 %v1082_v28 }
 0x131   : > { %v1717_v36 = vpop.eup %1716  ;;  %1730 = vrcp.f32 %v1081_v32  ;;  %v1083_v44 = vadd.f32 1.0, %v1715_v34 }
 0x132   : > { %v1719_v46 = vpop.eup %1718  ;;  %1732 = vrcp.f32 %v1084_v35  ;;  %v1086_v48 = vadd.f32 1.0, %v1717_v36 }
 0x133   : > { %v1721_v49 = vpop.eup %1720  ;;  %1734 = vpow2.f32 %v1401_v38  ;;  %v1085_v45 = vadd.f32 1.0, %v1719_v46 }
 0x134   : > { %1736 = vpow2.f32 %v1400_v41  ;;  %v1723_v55 = vpop.eup %1722  ;;  %v1088_v56 = vadd.f32 1.0, %v1721_v49 }
 0x135   : > { %1738 = vrcp.f32 %v1083_v44  ;;  %v1725_v61 = vpop.eup %1724  ;;  %v1087_v0 = vadd.f32 1.0, %v1723_v55 }
 0x136   : > { %1740 = vrcp.f32 %v1086_v48  ;;  %v1727_v63 = vpop.eup %1726  ;;  %v1089_v14 = vadd.f32 1.0, %v1725_v61 }
 0x137   : > { %1742 = vpow2.f32 %v1403_v50  ;;  %v1090_v10 = vadd.f32 1.0, %v1727_v63 }
 0x138   : > { %1744 = vpow2.f32 %v1402_v52 }
 0x139   : > { %1746 = vrcp.f32 %v1085_v45 }
 0x13a   : > { %v1729_v2 = vpop.eup %1728  ;;  %1748 = vrcp.f32 %v1088_v56 }
 0x13b   : > { %v1731_v5 = vpop.eup %1730  ;;  %1750 = vpow2.f32 %v1405_v58 }
 0x13c   : > { %v1733_v9 = vpop.eup %1732  ;;  %1752 = vpow2.f32 %v1404_v62 }
 0x13d   : > { %v1735_v13 = vpop.eup %1734  ;;  %1754 = vrcp.f32 %v1087_v0 }
 0x13e   : > { %v1737_v16 = vpop.eup %1736  ;;  %1756 = vrcp.f32 %v1090_v10  ;;  %v1092_v25 = vadd.f32 1.0, %v1735_v13 }
 0x13f   : > { %v1739_v20 = vpop.eup %1738  ;;  %1758 = vrcp.f32 %v1089_v14  ;;  %v1091_v29 = vadd.f32 1.0, %v1737_v16 }
 0x140   : > { %v1741_v24 = vpop.eup %1740  ;;  %1760 = vrcp.f32 %v1092_v25 }
 0x141   : > { %v1743_v28 = vpop.eup %1742  ;;  %1762 = vrcp.f32 %v1091_v29  ;;  %v1146_v29 = vlaneseq }
 0x142   : > { %v1745_v31 = vpop.eup %1744  ;;  %v1094_v41 = vadd.f32 1.0, %v1743_v28 }
 0x143   : > { %v1747_v35 = vpop.eup %1746  ;;  %v1093_v46 = vadd.f32 1.0, %v1745_v31 }
 0x144   : > { %v1749_v40 = vpop.eup %1748  ;;  %1764 = vrcp.f32 %v1094_v41  ;;  %v1155_v41 = vld [vmem:[%s2015_s11] sm:$0xf] }
 0x145   : > { %v1751_v44 = vpop.eup %1750  ;;  %1766 = vrcp.f32 %v1093_v46 }
 0x146   : > { %v1753_v49 = vpop.eup %1752 }
 0x147   : > { %v1755_v53 = vpop.eup %1754 }
 0x148   : > { %v1757_v62 = vpop.eup %1756 }
 0x1db   : > { %v1524_v57 = vpop.f32.mrb[0].mxu1 }
 0x1dc   : > { %v802_v59 = vadd.f32 %v1524_v57, %v2168_v54  ;;  %v796_v60 = vpop.f32.mrb[1].mxu1  ;;  %v1096_v57 = vadd.f32 1.0, %v1751_v44 }
 0x1dd   : > { %v797_v47 = vadd.f32 %v2168_v54, %v796_v60  ;;  %v1095_v60 = vadd.f32 1.0, %v1753_v49 }
 0x1de   : > { %v876_v1 = vmax.f32 %v802_v59, 0.0  ;;  %1768 = vrcp.f32 %v1096_v57 }
 0x1df   : > { %v875_v3 = vmax.f32 %v797_v47, 0.0  ;;  %v1527_v4 = vpop.f32.mrb[2].mxu1  ;;  %1770 = vrcp.f32 %v1095_v60 }
 0x1e0   : > { %v1130_v6 = vmul.f32 %v1729_v2, %v876_v1  ;;  %v812_v7 = vadd.f32 %v1527_v4, %v2168_v54  ;;  %v806_v8 = vpop.f32.mrb[3].mxu1  ;;  %v1759_v1 = vpop.eup %1758 }
 0x1e1   : > { %v1129_v11 = vmul.f32 %v1731_v5, %v875_v3  ;;  %v807_v12 = vadd.f32 %v2168_v54, %v806_v8  ;;  %v1761_v8 = vpop.eup %1760 }
 0x1e2   : > { %v878_v15 = vmax.f32 %v812_v7, 0.0 }
 0x1e3   : > { %v1606_v17 = vpack.c.bf16 %v1130_v6, %v1129_v11  ;;  %v877_v18 = vmax.f32 %v807_v12, 0.0  ;;  %v1530_v19 = vpop.f32.mrb[4].mxu1  ;;  %v1763_v12 = vpop.eup %1762 }
 0x1e4   : > { %v1132_v21 = vmul.f32 %v1733_v9, %v878_v15  ;;  %v822_v22 = vadd.f32 %v1530_v19, %v2168_v54  ;;  %v816_v23 = vpop.f32.mrb[5].mxu1  ;;  %v1765_v19 = vpop.eup %1764 }
 0x1e5   : > { %v1131_v26 = vmul.f32 %v1739_v20, %v877_v18  ;;  %v817_v27 = vadd.f32 %v2168_v54, %v816_v23  ;;  %1607 = vmatpush3.bf16.msra.mxu0 %v1606_v17  ;;  %v1767_v23 = vpop.eup %1766 }
 0x1e6   : > { %v880_v30 = vmax.f32 %v822_v22, 0.0  ;;  %1608 = vmatprep.subr.bf16.mxu0 %v1870_v37 }
 0x1e7   : > { %v1609_v32 = vpack.c.bf16 %v1132_v21, %v1131_v26  ;;  %v879_v33 = vmax.f32 %v817_v27, 0.0  ;;  %v1533_v34 = vpop.f32.mrb[6].mxu1 }
 0x1e8   : > { %v1134_v36 = vmul.f32 %v1741_v24, %v880_v30  ;;  %v832_v38 = vadd.f32 %v1533_v34, %v2168_v54  ;;  %v826_v39 = vpop.f32.mrb[7].mxu1  ;;  %v1769_v31 = vpop.eup %1768 }
 0x1e9   : > { %v1133_v42 = vmul.f32 %v1747_v35, %v879_v33  ;;  %v827_v43 = vadd.f32 %v2168_v54, %v826_v39  ;;  %1610 = vmatpush3.bf16.msra.mxu0 %v1609_v32  ;;  %v1771_v34 = vpop.eup %1770 }
 0x1ea   : > { %v882_v48 = vmax.f32 %v832_v38, 0.0  ;;  %1611 = vmatprep.subr.bf16.mxu0 %v1870_v37  ;;  %v1147_v38 = vshrl.u32 %v1146_v29, 7 }
 0x1eb   : > { %v1612_v50 = vpack.c.bf16 %v1134_v36, %v1133_v42  ;;  %v881_v51 = vmax.f32 %v827_v43, 0.0  ;;  %v1536_v52 = vpop.f32.mrb[8].mxu1 }
 0x1ec   : > { %v1136_v45 = vmul.f32 %v1749_v40, %v882_v48  ;;  %v842_v55 = vadd.f32 %v1536_v52, %v2168_v54  ;;  %v836_v56 = vpop.f32.mrb[9].mxu1  ;;  %v1873_v40 = vmov 1.0  }
 0x1ed   : > { %v1135_v58 = vmul.f32 %v1755_v53, %v881_v51  ;;  %v837_v59 = vadd.f32 %v2168_v54, %v836_v56  ;;  %1613 = vmatpush3.bf16.msra.mxu0 %v1612_v50 }
 0x1ee   : > { %v884_v61 = vmax.f32 %v842_v55, 0.0  ;;  %1614 = vmatprep.subr.bf16.mxu0 %v1870_v37 }
 0x1ef   : > { %v1615_v47 = vpack.c.bf16 %v1136_v45, %v1135_v58  ;;  %v883_v63 = vmax.f32 %v837_v59, 0.0  ;;  %v1539_v0 = vpop.f32.mrb[10].mxu1 }
 0x1f0   : > { %v1138_v2 = vmul.f32 %v1757_v62, %v884_v61  ;;  %v852_v3 = vadd.f32 %v1539_v0, %v2168_v54  ;;  %v846_v4 = vpop.f32.mrb[11].mxu1 }
 0x1f1   : > { %v1137_v5 = vmul.f32 %v1759_v1, %v883_v63  ;;  %v847_v6 = vadd.f32 %v2168_v54, %v846_v4  ;;  %1616 = vmatpush3.bf16.msra.mxu0 %v1615_v47 }
 0x1f2   : > { %v886_v7 = vmax.f32 %v852_v3, 0.0  ;;  %1617 = vmatprep.subr.bf16.mxu0 %v1870_v37 }
 0x1f3   : > { %v1618_v9 = vpack.c.bf16 %v1138_v2, %v1137_v5  ;;  %v885_v10 = vmax.f32 %v847_v6, 0.0  ;;  %v1542_v11 = vpop.f32.mrb[12].mxu1 }
 0x1f4   : > { %v1140_v13 = vmul.f32 %v1761_v8, %v886_v7  ;;  %v862_v14 = vadd.f32 %v1542_v11, %v2168_v54  ;;  %v856_v15 = vpop.f32.mrb[13].mxu1 }
 0x1f5   : > { %v1139_v16 = vmul.f32 %v1763_v12, %v885_v10  ;;  %v857_v17 = vadd.f32 %v2168_v54, %v856_v15  ;;  %1619 = vmatpush3.bf16.msra.mxu0 %v1618_v9 }
 0x1f6   : > { %v888_v18 = vmax.f32 %v862_v14, 0.0  ;;  %1620 = vmatprep.subr.bf16.mxu0 %v1870_v37 }
 0x1f7   : > { %v1621_v20 = vpack.c.bf16 %v1140_v13, %v1139_v16  ;;  %v887_v21 = vmax.f32 %v857_v17, 0.0  ;;  %v1545_v22 = vpop.f32.mrb[14].mxu1 }
 0x1f8   : > { %v1142_v24 = vmul.f32 %v1765_v19, %v888_v18  ;;  %v872_v25 = vadd.f32 %v1545_v22, %v2168_v54  ;;  %v866_v26 = vpop.f32.mrb[15].mxu1 }
 0x1f9   : > { %v1141_v27 = vmul.f32 %v1767_v23, %v887_v21  ;;  %v867_v28 = vadd.f32 %v2168_v54, %v866_v26  ;;  %1622 = vmatpush3.bf16.msra.mxu0 %v1621_v20  ;;  %v1406_v54 = vld [vmem:[%s420_s25] ss:$0 sm:$0xff]  ;;  %s2283_s25 = sand.u32 1, %s1842_s10  }
 0x1fa   : > { %v890_v30 = vmax.f32 %v872_v25, 0.0  ;;  %1623 = vmatprep.subr.bf16.mxu0 %v1870_v37  ;;  %vm1152_vm4 = vcmp.eq.s32.totalorder %v1406_v54, %v1147_v38  ;;  %s1230_s14 = scalar_lea.sflag [#allocation3], %s2283_s25 }
 0x1fb   : > { %v1624_v32 = vpack.c.bf16 %v1142_v24, %v1141_v27  ;;  %v889_v33 = vmax.f32 %v867_v28, 0.0 }
 0x1fc   : > { %v1144_v35 = vmul.f32 %v1769_v31, %v890_v30 }
 0x1fd   : > { %v1143_v36 = vmul.f32 %v1771_v34, %v889_v33  ;;  %1625 = vmatpush3.bf16.msra.mxu0 %v1624_v32 }
 0x1fe   : > { %1626 = vmatprep.subr.bf16.mxu0 %v1870_v37 }
 0x1ff   : > { %v1627_v39 = vpack.c.bf16 %v1144_v35, %v1143_v36 }
 0x201   : > { %1628 = vmatpush3.bf16.msra.mxu0 %v1627_v39 }
 0x204   : > { %1579 = vmatmul.mubr.msk.f32.vlgmr.msra.gmra.mrb[16].mxu0 %vm1152_vm4, %v1873_v40 }
 0x2d7   : > { %v1222_v42 = vpop.f32.mrb[16].mxu0 }
 0x2d8   : > { %v1226_v43 = vadd.f32 %v1222_v42, %v1155_v41  ;;  %v1580_v37 = vpop.f32.mrb[17].mxu0 }
 0x2da   : > { %1228 = vst.msk [vmem:[%s2015_s11] sm:$0xf] %vm1227_vm5, %v1226_v43 }
 0x2db   : > { %1785 = shalt.err (!%p1782_p8)
}
 0x2dc   : > { %s1786_s11 = scalar_lea.hbm %s2204_s29, 64  ;;  %s1790_s17 = scalar_lea.hbm %s2269_s9, 128 }
 0x2dd   : > { %p1787_p10 = scmp.ne.s32.totalorder %s2204_s29, %s1786_s11  ;;  %p1791_p13 = scmp.lt.u32.totalorder %s2204_s29, %s2269_s9 }
 0x2de   : > { %p1792_p0 = scmp.lt.u32.totalorder %s1790_s17, %s1786_s11  ;;  %p1794_p2 = scmp.lt.u32.totalorder %s1786_s11, %s2204_s29 }
 0x2df   : > { %p1788_p11 = pnand %p1787_p10, %p1974_p3 }
 0x2e0   : > { %p1793_p1 = por %p1792_p0, %p1791_p13 }
 0x2e1   : > { %p1789_p12 = pneg %p1788_p11 }
 0x2e2   : > { %p1795_p4 = por %p1794_p2, %p1793_p1 }
 0x2e4   : > { %p1796_p5 = pnand %p1795_p4, %p1789_p12 }
 0x2e6   : > { %1799 = shalt.err (!%p1796_p5)
}
 0x2e7   : > { %1629 = dma.vmem_to_hbm [thread:$0]  (%p1974_p3), %s2206_s19, 64, %s2204_s29, %s1230_s14  }
 0x2e8 PF: > { %p1635_p6 = scmp.ge.s32.totalorder %s1866_s16, 2  ;;  %s1255_s20 = sand.u32 1, %s1838_s30  }
 0x2e9   : > { %s1256_s26 = scalar_lea.sflag [#allocation3], %s1255_s20 }
 0x2ea   : > { %p1632_p7 = pnand %p1635_p6, %p1984_p9 }
 0x2ec   : > { %1833 = dma.done.wait (!%p1632_p7), %s1256_s26, 64  }
 0x2ed   : > { %1835 = vsyncadd (!%p1632_p7), %s1256_s26, 4294967232  ;;  %s22_s16 = sadd.s32 1, %s1866_s16   ;;  %s2284_s25 = sld [smem:[#allocation5_spill]] }
 0x2ee   : > { %p19_p8 = scmp.ge.s32.totalorder %s22_s16, 6   ;;  %s2285_s11 = sld [smem:[#allocation10_spill]] }
 0x2ef   : > { %s2286_s12 = sld [smem:[#allocation6_spill]]  ;;  %s2287_s13 = sld [smem:[#allocation7_spill]] }
 0x2f0   : > { %s2288_s14 = sld [smem:[#allocation8_spill]]  ;;  %s2289_s15 = sld [smem:[#allocation9_spill]] }
 0x2f1   : > { %s2290_s30 = smov %s1842_s10  ;;  %21 = sbr.rel (!%p19_p8) target bundleno = 5 (0x5), region = 101 }
 0x2f3   : > { %s2291_s10 = smov %s2284_s25 }
 0x2f8   :  { %1261 = vsyncpa [#allocation3], 1 }
 0x2f9   :  { %1263 = vsyncpa [#allocation3 + $0x1], 1 }

</bundles_post_ra>
